<compile_context>
chip_gen: v7x
topology: tpu7x:2x2x1
jax: 0.10.0
libtpu: 0.0.40
codegen_flags: <defaults>
</compile_context>

<pallas_src>
import functools
import math

import jax
import jax.numpy as jnp
from jax.experimental import pallas as pl
from jax.experimental.pallas import tpu as pltpu


def _cdiv(a, b):
    return -(-a // b)


def _round_up(a, b):
    return _cdiv(a, b) * b


def _decomp_kernel(x_ref, res_ref, mean_ref, *, kernel_size, L):
    """Block of shape (TR, W) where each row packs W//L independent series."""
    xf = x_ref[...].astype(jnp.float32)          # (TR, W)
    W = xf.shape[-1]
    pad = (kernel_size - 1) // 2

    # Per-lane position within its length-L segment (data independent, (1, W)).
    lane = jax.lax.broadcasted_iota(jnp.int32, (1, W), 1)
    lm = lane % L

    acc = None
    for delta in range(-pad, pad + 1):
        if abs(delta) >= L:
            # Taps this far out always clamp; their mass is already counted in
            # the extra_left / extra_right terms of nearer offsets.
            continue

        # Coefficient of x[p + delta] in K * mean[p]:
        #   1 if the (unclamped) tap lies inside the segment, plus the number
        #   of clamped taps that replicate the segment's first/last element.
        in_range = jnp.logical_and(lm + delta >= 0, lm + delta <= L - 1)
        coef = in_range.astype(jnp.float32)
        if delta <= 0:
            extra_left = jnp.where(lm == -delta,
                                   jnp.maximum(pad - lm, 0), 0)
            coef = coef + extra_left.astype(jnp.float32)
        if delta >= 0:
            extra_right = jnp.where(lm == (L - 1 - delta),
                                    jnp.maximum(lm + pad - (L - 1), 0), 0)
            coef = coef + extra_right.astype(jnp.float32)

        if delta == 0:
            shifted = xf
        else:
            # shifted[p] = x[(p + delta) mod W]; wrap lanes have coef == 0.
            shifted = pltpu.roll(xf, shift=(-delta) % W, axis=1)

        term = shifted * coef
        acc = term if acc is None else acc + term

    mean = acc * (1.0 / kernel_size)
    mean_ref[...] = mean.astype(mean_ref.dtype)
    res_ref[...] = (xf - mean).astype(res_ref.dtype)


def series_decomp2_pallas(x, kernel_size, *, target_block_elems=512 * 1024):
    """x: (B, D, N, L) -> (res, moving_mean), both (B, D, N, L)."""
    assert kernel_size % 2 == 1, "kernel_size must be odd to preserve length L"
    B, D, N, L = x.shape
    M = B * D * N
    x2 = x.reshape(M, L)

    # Lane-dense packing: W = lcm(L, 128) lanes per row, G series per row.
    G = 128 // math.gcd(L, 128)
    W = G * L

    R = _cdiv(M, G)                                  # rows of the (R, W) view
    tr = max(1, min(target_block_elems // W, R))     # block rows
    grid_r = _cdiv(R, tr)
    if grid_r > 1:
        # Re-balance to minimize tail padding; keep sublane multiple of 8.
        tr = _round_up(_cdiv(R, grid_r), 8)
        grid_r = _cdiv(R, tr)
    Rp = grid_r * tr
    Mp = Rp * G

    if Mp != M:
        x2 = jnp.pad(x2, ((0, Mp - M), (0, 0)))
    xw = x2.reshape(Rp, W)

    kernel = functools.partial(_decomp_kernel, kernel_size=kernel_size, L=L)

    res_w, mean_w = pl.pallas_call(
        kernel,
        out_shape=(
            jax.ShapeDtypeStruct((Rp, W), x.dtype),
            jax.ShapeDtypeStruct((Rp, W), x.dtype),
        ),
        grid_spec=pltpu.PrefetchScalarGridSpec(
            num_scalar_prefetch=0,
            grid=(grid_r,),
            in_specs=[pl.BlockSpec((tr, W), lambda i: (i, 0))],
            out_specs=[
                pl.BlockSpec((tr, W), lambda i: (i, 0)),
                pl.BlockSpec((tr, W), lambda i: (i, 0)),
            ],
        ),
        compiler_params=pltpu.CompilerParams(
            dimension_semantics=("parallel",),
            vmem_limit_bytes=48 * 1024 * 1024,
        ),
    )(xw)

    res2 = res_w.reshape(Mp, L)[:M]
    mean2 = mean_w.reshape(Mp, L)[:M]
    return res2.reshape(B, D, N, L), mean2.reshape(B, D, N, L)


def _reference(x, kernel_size):
    # Pure-JAX reference mirroring the PyTorch module.
    pad = (kernel_size - 1) // 2
    xp = jnp.pad(x, ((0, 0), (0, 0), (0, 0), (pad, pad)), mode="edge")
    acc = sum(xp[..., d:d + x.shape[-1]] for d in range(kernel_size))
    mean = acc / kernel_size
    return x - mean, mean


if __name__ == "__main__":
    key = jax.random.PRNGKey(0)

    # Main case: matches the module's (B, D, N, L) layout.
    B, D, N, L = 2, 4, 16, 16
    kernel_size = 5  # odd, as required by the module's reshape-back semantics
    x = jax.random.normal(key, (B, D, N, L), dtype=jnp.float32)

    res, mean = series_decomp2_pallas(x, kernel_size)
    jax.block_until_ready((res, mean))
    res_ref, mean_ref = _reference(x, kernel_size)
    assert jnp.allclose(res, res_ref, atol=1e-5, rtol=1e-5)
    assert jnp.allclose(mean, mean_ref, atol=1e-5, rtol=1e-5)

    # Secondary case: exercises row padding and an L that does not divide 128.
    x2 = jax.random.normal(jax.random.PRNGKey(1), (1, 3, 5, 12),
                           dtype=jnp.float32)
    r2, m2 = series_decomp2_pallas(x2, 3)
    jax.block_until_ready((r2, m2))
    r2_ref, m2_ref = _reference(x2, 3)
    assert jnp.allclose(r2, r2_ref, atol=1e-5, rtol=1e-5)
    assert jnp.allclose(m2, m2_ref, atol=1e-5, rtol=1e-5)

    print("KERNEL_OK")
</pallas_src>

<mosaic_0001>
module attributes {stable_mosaic.version = 11 : i64} {
  func.func @_decomp_kernel(%arg0: i32, %arg1: memref<16x128xf32, #tpu.memory_space<vmem>>, %arg2: memref<16x128xf32, #tpu.memory_space<vmem>>, %arg3: memref<16x128xf32, #tpu.memory_space<vmem>>) attributes {dimension_semantics = [#tpu.dimension_semantics<parallel>], iteration_bounds = array<i64: 1>, scalar_prefetch = 0 : i64, scratch_operands = 0 : i64, tpu.core_type = #tpu.core_type<tc>, window_params = [{transform_indices = @transform_0, window_bounds = array<i64: 16, 128>}, {transform_indices = @transform_1, window_bounds = array<i64: 16, 128>}, {transform_indices = @transform_2, window_bounds = array<i64: 16, 128>}]} {
    %c0 = arith.constant 0 : index
    %c0_0 = arith.constant 0 : index
    %0 = vector.load %arg1[%c0, %c0_0] : memref<16x128xf32, #tpu.memory_space<vmem>>, vector<16x128xf32>
    %1 = tpu.iota {dimensions = array<i32: 1>} : vector<1x128xi32>
    %c16_i32 = arith.constant 16 : i32
    %c0_i32 = arith.constant 0 : i32
    %2 = arith.cmpi eq, %c16_i32, %c0_i32 : i32
    %c1_i32 = arith.constant 1 : i32
    %3 = arith.select %2, %c1_i32, %c16_i32 : i32
    %4 = vector.broadcast %3 : i32 to vector<1x128xi32>
    %5 = arith.remsi %1, %4 : vector<1x128xi32>
    %c0_i32_1 = arith.constant 0 : i32
    %6 = vector.broadcast %c0_i32_1 : i32 to vector<1x128xi32>
    %7 = arith.cmpi ne, %5, %6 : vector<1x128xi32>
    %c0_i32_2 = arith.constant 0 : i32
    %8 = vector.broadcast %c0_i32_2 : i32 to vector<1x128xi32>
    %9 = arith.cmpi slt, %5, %8 : vector<1x128xi32>
    %c0_i32_3 = arith.constant 0 : i32
    %10 = arith.cmpi slt, %3, %c0_i32_3 : i32
    %11 = vector.broadcast %10 : i1 to vector<1x128xi1>
    %12 = vector.broadcast %11 : vector<1x128xi1> to vector<1x128xi1>
    %13 = arith.xori %9, %12 : vector<1x128xi1>
    %14 = arith.andi %13, %7 : vector<1x128xi1>
    %15 = vector.broadcast %3 : i32 to vector<1x128xi32>
    %16 = arith.addi %5, %15 : vector<1x128xi32>
    %17 = arith.select %14, %16, %5 : vector<1x128xi1>, vector<1x128xi32>
    %c-2_i32 = arith.constant -2 : i32
    %18 = vector.broadcast %c-2_i32 : i32 to vector<1x128xi32>
    %19 = arith.addi %17, %18 : vector<1x128xi32>
    %c0_i32_4 = arith.constant 0 : i32
    %20 = vector.broadcast %c0_i32_4 : i32 to vector<1x128xi32>
    %21 = arith.cmpi sge, %19, %20 : vector<1x128xi32>
    %c-2_i32_5 = arith.constant -2 : i32
    %22 = vector.broadcast %c-2_i32_5 : i32 to vector<1x128xi32>
    %23 = arith.addi %17, %22 : vector<1x128xi32>
    %c15_i32 = arith.constant 15 : i32
    %24 = vector.broadcast %c15_i32 : i32 to vector<1x128xi32>
    %25 = arith.cmpi sle, %23, %24 : vector<1x128xi32>
    %26 = arith.andi %21, %25 : vector<1x128xi1>
    %27 = arith.extui %26 : vector<1x128xi1> to vector<1x128xi32>
    %28 = arith.sitofp %27 : vector<1x128xi32> to vector<1x128xf32>
    %c2_i32 = arith.constant 2 : i32
    %29 = vector.broadcast %c2_i32 : i32 to vector<1x128xi32>
    %30 = arith.cmpi eq, %17, %29 : vector<1x128xi32>
    %c2_i32_6 = arith.constant 2 : i32
    %31 = vector.broadcast %c2_i32_6 : i32 to vector<1x128xi32>
    %32 = arith.subi %31, %17 : vector<1x128xi32>
    %c0_i32_7 = arith.constant 0 : i32
    %33 = vector.broadcast %c0_i32_7 : i32 to vector<1x128xi32>
    %34 = arith.maxsi %32, %33 : vector<1x128xi32>
    %c0_i32_8 = arith.constant 0 : i32
    %35 = vector.broadcast %c0_i32_8 : i32 to vector<1x128xi32>
    %36 = arith.select %30, %34, %35 : vector<1x128xi1>, vector<1x128xi32>
    %37 = arith.sitofp %36 : vector<1x128xi32> to vector<1x128xf32>
    %38 = arith.addf %28, %37 : vector<1x128xf32>
    %c2_i32_9 = arith.constant 2 : i32
    %39 = tpu.dynamic_rotate %0 by %c2_i32_9 dim 1 : vector<16x128xf32>, i32 -> vector<16x128xf32>
    %40 = vector.broadcast %38 : vector<1x128xf32> to vector<16x128xf32>
    %41 = arith.mulf %39, %40 : vector<16x128xf32>
    %c-1_i32 = arith.constant -1 : i32
    %42 = vector.broadcast %c-1_i32 : i32 to vector<1x128xi32>
    %43 = arith.addi %17, %42 : vector<1x128xi32>
    %c0_i32_10 = arith.constant 0 : i32
    %44 = vector.broadcast %c0_i32_10 : i32 to vector<1x128xi32>
    %45 = arith.cmpi sge, %43, %44 : vector<1x128xi32>
    %c-1_i32_11 = arith.constant -1 : i32
    %46 = vector.broadcast %c-1_i32_11 : i32 to vector<1x128xi32>
    %47 = arith.addi %17, %46 : vector<1x128xi32>
    %c15_i32_12 = arith.constant 15 : i32
    %48 = vector.broadcast %c15_i32_12 : i32 to vector<1x128xi32>
    %49 = arith.cmpi sle, %47, %48 : vector<1x128xi32>
    %50 = arith.andi %45, %49 : vector<1x128xi1>
    %51 = arith.extui %50 : vector<1x128xi1> to vector<1x128xi32>
    %52 = arith.sitofp %51 : vector<1x128xi32> to vector<1x128xf32>
    %c1_i32_13 = arith.constant 1 : i32
    %53 = vector.broadcast %c1_i32_13 : i32 to vector<1x128xi32>
    %54 = arith.cmpi eq, %17, %53 : vector<1x128xi32>
    %c2_i32_14 = arith.constant 2 : i32
    %55 = vector.broadcast %c2_i32_14 : i32 to vector<1x128xi32>
    %56 = arith.subi %55, %17 : vector<1x128xi32>
    %c0_i32_15 = arith.constant 0 : i32
    %57 = vector.broadcast %c0_i32_15 : i32 to vector<1x128xi32>
    %58 = arith.maxsi %56, %57 : vector<1x128xi32>
    %c0_i32_16 = arith.constant 0 : i32
    %59 = vector.broadcast %c0_i32_16 : i32 to vector<1x128xi32>
    %60 = arith.select %54, %58, %59 : vector<1x128xi1>, vector<1x128xi32>
    %61 = arith.sitofp %60 : vector<1x128xi32> to vector<1x128xf32>
    %62 = arith.addf %52, %61 : vector<1x128xf32>
    %c1_i32_17 = arith.constant 1 : i32
    %63 = tpu.dynamic_rotate %0 by %c1_i32_17 dim 1 : vector<16x128xf32>, i32 -> vector<16x128xf32>
    %64 = vector.broadcast %62 : vector<1x128xf32> to vector<16x128xf32>
    %65 = arith.mulf %63, %64 : vector<16x128xf32>
    %66 = arith.addf %41, %65 : vector<16x128xf32>
    %c0_i32_18 = arith.constant 0 : i32
    %67 = vector.broadcast %c0_i32_18 : i32 to vector<1x128xi32>
    %68 = arith.addi %17, %67 : vector<1x128xi32>
    %c0_i32_19 = arith.constant 0 : i32
    %69 = vector.broadcast %c0_i32_19 : i32 to vector<1x128xi32>
    %70 = arith.cmpi sge, %68, %69 : vector<1x128xi32>
    %c0_i32_20 = arith.constant 0 : i32
    %71 = vector.broadcast %c0_i32_20 : i32 to vector<1x128xi32>
    %72 = arith.addi %17, %71 : vector<1x128xi32>
    %c15_i32_21 = arith.constant 15 : i32
    %73 = vector.broadcast %c15_i32_21 : i32 to vector<1x128xi32>
    %74 = arith.cmpi sle, %72, %73 : vector<1x128xi32>
    %75 = arith.andi %70, %74 : vector<1x128xi1>
    %76 = arith.extui %75 : vector<1x128xi1> to vector<1x128xi32>
    %77 = arith.sitofp %76 : vector<1x128xi32> to vector<1x128xf32>
    %c0_i32_22 = arith.constant 0 : i32
    %78 = vector.broadcast %c0_i32_22 : i32 to vector<1x128xi32>
    %79 = arith.cmpi eq, %17, %78 : vector<1x128xi32>
    %c2_i32_23 = arith.constant 2 : i32
    %80 = vector.broadcast %c2_i32_23 : i32 to vector<1x128xi32>
    %81 = arith.subi %80, %17 : vector<1x128xi32>
    %c0_i32_24 = arith.constant 0 : i32
    %82 = vector.broadcast %c0_i32_24 : i32 to vector<1x128xi32>
    %83 = arith.maxsi %81, %82 : vector<1x128xi32>
    %c0_i32_25 = arith.constant 0 : i32
    %84 = vector.broadcast %c0_i32_25 : i32 to vector<1x128xi32>
    %85 = arith.select %79, %83, %84 : vector<1x128xi1>, vector<1x128xi32>
    %86 = arith.sitofp %85 : vector<1x128xi32> to vector<1x128xf32>
    %87 = arith.addf %77, %86 : vector<1x128xf32>
    %c15_i32_26 = arith.constant 15 : i32
    %88 = vector.broadcast %c15_i32_26 : i32 to vector<1x128xi32>
    %89 = arith.cmpi eq, %17, %88 : vector<1x128xi32>
    %c2_i32_27 = arith.constant 2 : i32
    %90 = vector.broadcast %c2_i32_27 : i32 to vector<1x128xi32>
    %91 = arith.addi %17, %90 : vector<1x128xi32>
    %c15_i32_28 = arith.constant 15 : i32
    %92 = vector.broadcast %c15_i32_28 : i32 to vector<1x128xi32>
    %93 = arith.subi %91, %92 : vector<1x128xi32>
    %c0_i32_29 = arith.constant 0 : i32
    %94 = vector.broadcast %c0_i32_29 : i32 to vector<1x128xi32>
    %95 = arith.maxsi %93, %94 : vector<1x128xi32>
    %c0_i32_30 = arith.constant 0 : i32
    %96 = vector.broadcast %c0_i32_30 : i32 to vector<1x128xi32>
    %97 = arith.select %89, %95, %96 : vector<1x128xi1>, vector<1x128xi32>
    %98 = arith.sitofp %97 : vector<1x128xi32> to vector<1x128xf32>
    %99 = arith.addf %87, %98 : vector<1x128xf32>
    %100 = vector.broadcast %99 : vector<1x128xf32> to vector<16x128xf32>
    %101 = arith.mulf %0, %100 : vector<16x128xf32>
    %102 = arith.addf %66, %101 : vector<16x128xf32>
    %c1_i32_31 = arith.constant 1 : i32
    %103 = vector.broadcast %c1_i32_31 : i32 to vector<1x128xi32>
    %104 = arith.addi %17, %103 : vector<1x128xi32>
    %c0_i32_32 = arith.constant 0 : i32
    %105 = vector.broadcast %c0_i32_32 : i32 to vector<1x128xi32>
    %106 = arith.cmpi sge, %104, %105 : vector<1x128xi32>
    %c1_i32_33 = arith.constant 1 : i32
    %107 = vector.broadcast %c1_i32_33 : i32 to vector<1x128xi32>
    %108 = arith.addi %17, %107 : vector<1x128xi32>
    %c15_i32_34 = arith.constant 15 : i32
    %109 = vector.broadcast %c15_i32_34 : i32 to vector<1x128xi32>
    %110 = arith.cmpi sle, %108, %109 : vector<1x128xi32>
    %111 = arith.andi %106, %110 : vector<1x128xi1>
    %112 = arith.extui %111 : vector<1x128xi1> to vector<1x128xi32>
    %113 = arith.sitofp %112 : vector<1x128xi32> to vector<1x128xf32>
    %c14_i32 = arith.constant 14 : i32
    %114 = vector.broadcast %c14_i32 : i32 to vector<1x128xi32>
    %115 = arith.cmpi eq, %17, %114 : vector<1x128xi32>
    %c2_i32_35 = arith.constant 2 : i32
    %116 = vector.broadcast %c2_i32_35 : i32 to vector<1x128xi32>
    %117 = arith.addi %17, %116 : vector<1x128xi32>
    %c15_i32_36 = arith.constant 15 : i32
    %118 = vector.broadcast %c15_i32_36 : i32 to vector<1x128xi32>
    %119 = arith.subi %117, %118 : vector<1x128xi32>
    %c0_i32_37 = arith.constant 0 : i32
    %120 = vector.broadcast %c0_i32_37 : i32 to vector<1x128xi32>
    %121 = arith.maxsi %119, %120 : vector<1x128xi32>
    %c0_i32_38 = arith.constant 0 : i32
    %122 = vector.broadcast %c0_i32_38 : i32 to vector<1x128xi32>
    %123 = arith.select %115, %121, %122 : vector<1x128xi1>, vector<1x128xi32>
    %124 = arith.sitofp %123 : vector<1x128xi32> to vector<1x128xf32>
    %125 = arith.addf %113, %124 : vector<1x128xf32>
    %c127_i32 = arith.constant 127 : i32
    %126 = tpu.dynamic_rotate %0 by %c127_i32 dim 1 : vector<16x128xf32>, i32 -> vector<16x128xf32>
    %127 = vector.broadcast %125 : vector<1x128xf32> to vector<16x128xf32>
    %128 = arith.mulf %126, %127 : vector<16x128xf32>
    %129 = arith.addf %102, %128 : vector<16x128xf32>
    %c2_i32_39 = arith.constant 2 : i32
    %130 = vector.broadcast %c2_i32_39 : i32 to vector<1x128xi32>
    %131 = arith.addi %17, %130 : vector<1x128xi32>
    %c0_i32_40 = arith.constant 0 : i32
    %132 = vector.broadcast %c0_i32_40 : i32 to vector<1x128xi32>
    %133 = arith.cmpi sge, %131, %132 : vector<1x128xi32>
    %c2_i32_41 = arith.constant 2 : i32
    %134 = vector.broadcast %c2_i32_41 : i32 to vector<1x128xi32>
    %135 = arith.addi %17, %134 : vector<1x128xi32>
    %c15_i32_42 = arith.constant 15 : i32
    %136 = vector.broadcast %c15_i32_42 : i32 to vector<1x128xi32>
    %137 = arith.cmpi sle, %135, %136 : vector<1x128xi32>
    %138 = arith.andi %133, %137 : vector<1x128xi1>
    %139 = arith.extui %138 : vector<1x128xi1> to vector<1x128xi32>
    %140 = arith.sitofp %139 : vector<1x128xi32> to vector<1x128xf32>
    %c13_i32 = arith.constant 13 : i32
    %141 = vector.broadcast %c13_i32 : i32 to vector<1x128xi32>
    %142 = arith.cmpi eq, %17, %141 : vector<1x128xi32>
    %c2_i32_43 = arith.constant 2 : i32
    %143 = vector.broadcast %c2_i32_43 : i32 to vector<1x128xi32>
    %144 = arith.addi %17, %143 : vector<1x128xi32>
    %c15_i32_44 = arith.constant 15 : i32
    %145 = vector.broadcast %c15_i32_44 : i32 to vector<1x128xi32>
    %146 = arith.subi %144, %145 : vector<1x128xi32>
    %c0_i32_45 = arith.constant 0 : i32
    %147 = vector.broadcast %c0_i32_45 : i32 to vector<1x128xi32>
    %148 = arith.maxsi %146, %147 : vector<1x128xi32>
    %c0_i32_46 = arith.constant 0 : i32
    %149 = vector.broadcast %c0_i32_46 : i32 to vector<1x128xi32>
    %150 = arith.select %142, %148, %149 : vector<1x128xi1>, vector<1x128xi32>
    %151 = arith.sitofp %150 : vector<1x128xi32> to vector<1x128xf32>
    %152 = arith.addf %140, %151 : vector<1x128xf32>
    %c126_i32 = arith.constant 126 : i32
    %153 = tpu.dynamic_rotate %0 by %c126_i32 dim 1 : vector<16x128xf32>, i32 -> vector<16x128xf32>
    %154 = vector.broadcast %152 : vector<1x128xf32> to vector<16x128xf32>
    %155 = arith.mulf %153, %154 : vector<16x128xf32>
    %156 = arith.addf %129, %155 : vector<16x128xf32>
    %cst = arith.constant 2.000000e-01 : f32
    %157 = vector.broadcast %cst : f32 to vector<16x128xf32>
    %158 = arith.mulf %156, %157 : vector<16x128xf32>
    %c0_47 = arith.constant 0 : index
    %c0_48 = arith.constant 0 : index
    %159 = vector.load %arg3[%c0_47, %c0_48] : memref<16x128xf32, #tpu.memory_space<vmem>>, vector<16x128xf32>
    tpu.vector_store %arg3[%c0_47, %c0_48], %158 {strides = array<i32>} : memref<16x128xf32, #tpu.memory_space<vmem>>, vector<16x128xf32>,
    %160 = arith.subf %0, %158 : vector<16x128xf32>
    %c0_49 = arith.constant 0 : index
    %c0_50 = arith.constant 0 : index
    %161 = vector.load %arg2[%c0_49, %c0_50] : memref<16x128xf32, #tpu.memory_space<vmem>>, vector<16x128xf32>
    tpu.vector_store %arg2[%c0_49, %c0_50], %160 {strides = array<i32>} : memref<16x128xf32, #tpu.memory_space<vmem>>, vector<16x128xf32>,
    return
  }
  func.func @transform_0(%arg0: i32) -> (i32, i32) {
    %c0_i32 = arith.constant 0 : i32
    %c0_i32_0 = arith.constant 0 : i32
    return %arg0, %c0_i32 : i32, i32
  }
  func.func @transform_1(%arg0: i32) -> (i32, i32) {
    %c0_i32 = arith.constant 0 : i32
    %c0_i32_0 = arith.constant 0 : i32
    return %arg0, %c0_i32 : i32, i32
  }
  func.func @transform_2(%arg0: i32) -> (i32, i32) {
    %c0_i32 = arith.constant 0 : i32
    %c0_i32_0 = arith.constant 0 : i32
    return %arg0, %c0_i32 : i32, i32
  }
}

</mosaic_0001>

<bundles_post_ra>
// kernel: tpu_custom_call.1
= control target key start
LH: loop header
LB: loop body
LE: loop exit
PB: predicated region body
PF: predicated region fallthrough
CT: control target
= control target key end

     0   :  { %8 = vsyncpa [#allocation3], 0  ;;  %s372_s0 = inlined_call_operand.hbm [shape: f32[16,128], index: 0, kind: input, shape index: {}]   ;;  %s373_s1 = inlined_call_operand.hbm [shape: f32[16,128], index: 1, kind: output, shape index: {0}]   ;;  %s374_s2 = inlined_call_operand.hbm [shape: f32[16,128], index: 2, kind: output, shape index: {1}]  }
   0x1   :  { %9 = vsyncpa [#allocation4], 0 }
   0x2   :  { %10 = vsyncpa [#allocation7], 0  ;;  %s279_s9 = smov [#allocation2]   ;;  %s207_s13 = scalar_lea.hbm %s372_s0, 256 }
   0x3   :  { %s16_s10 = sshll.u32 %s279_s9, 4  ;;  %p208_p0 = scmp.ne.s32.totalorder %s372_s0, %s207_s13  ;;  %s17_s10 = int_to_ptr.vmem [resolvable:$true] %s16_s10 }
   0x4   :  { %p211_p1 = scmp.lt.u32.totalorder %s207_s13, %s372_s0 }
   0x6   :  { %p213_p2 = pnand %p211_p1, %p208_p0 }
   0x8   :  { %216 = shalt.err (!%p213_p2)
}
   0x9   :  { %s217_s18 = scalar_lea.vmem %s17_s10, 256  ;;  %p222_p4 = scmp.lt.s32.totalorder %s17_s10, %s17_s10 }
   0xa   :  { %p218_p3 = scmp.ne.s32.totalorder %s17_s10, %s217_s18  ;;  %p223_p5 = scmp.lt.s32.totalorder %s217_s18, %s217_s18 }
   0xc   :  { %p224_p6 = por %p223_p5, %p222_p4 }
   0xe   :  { %p225_p7 = pnand %p224_p6, %p218_p3 }
  0x10   :  { %228 = shalt.err (!%p225_p7)
}
  0x11   :  { %s280_s19 = smov 128   ;;  %s281_s20 = smov 8  }
  0x12   :  { %22 = dma.hbm_to_vmem [thread:$0]  %s372_s0, 256, %s17_s10, [#allocation3], %s280_s19, %s280_s19, %s281_s20  }
  0x13   :  { %273 = dma.done.wait [#allocation3], 256  }
  0x14   :  { %274 = vsyncadd [#allocation3], 4294967040  ;;  %v319_v0 = vld [vmem:[#allocation2] sm:$0xff]  ;;  %s282_s23 = smov 1   ;;  %s283_s24 = smov 2   ;;  %v323_v1 = vld [vmem:[#allocation2 + $0x8] sm:$0xff]  ;;  %v28_v2 = vlaneseq }
  0x15   :  { %71 = vrot.lane.b32.xlu1 %v319_v0, %s282_s23  ;;  %55 = vrot.lane.b32.xlu0 %v319_v0, %s283_s24  ;;  %s284_s25 = smov 127   ;;  %s285_s0 = smov 126   ;;  %v286_v13 = vmov 0.0  }
  0x16   :  { %v29_v3 = vand.u32 127, %v28_v2  ;;  %s287_s26 = smov [#allocation6]   ;;  %s288_s28 = smov [#allocation5]  }
  0x17   :  { %s160_s27 = sshll.u32 %s287_s26, 4  ;;  %s148_s29 = sshll.u32 %s288_s28, 4  ;;  %s161_s27 = int_to_ptr.vmem [resolvable:$true] %s160_s27  ;;  %s335_s29 = int_to_ptr.vmem [resolvable:$true] %s148_s29 }
  0x18   :  { %v34_v4 = vand.u32 15, %v29_v3  ;;  %s229_s30 = scalar_lea.vmem %s161_s27, 256  ;;  %p234_p9 = scmp.lt.s32.totalorder %s161_s27, %s161_s27 }
  0x19   :  { %73 = vrot.lane.b32.xlu1 %v323_v1, %s282_s23  ;;  %57 = vrot.lane.b32.xlu0 %v323_v1, %s283_s24  ;;  %p230_p8 = scmp.ne.s32.totalorder %s161_s27, %s229_s30  ;;  %p235_p10 = scmp.lt.s32.totalorder %s229_s30, %s229_s30 }
  0x1a   :  { %v49_v5 = vsub.s32 2, %v34_v4  ;;  %v89_v6 = vadd.s32 2, %v34_v4  ;;  %v61_v7 = vadd.s32 4294967295, %v34_v4  ;;  %v42_v9 = vadd.s32 4294967294, %v34_v4 }
  0x1b   :  { %vm67_vm2 = vcmp.eq.s32.totalorder %v34_v4, 1  ;;  %vm84_vm3 = vcmp.eq.s32.totalorder %v34_v4, 0  ;;  %vm48_vm5 = vcmp.eq.s32.totalorder %v34_v4, 2  ;;  %v100_v15 = vadd.s32 1, %v34_v4  ;;  %p236_p11 = por %p235_p10, %p234_p9 }
  0x1c   :  { %v193_v8 = vcvt.s32.f32 %v49_v5  ;;  %v184_v10 = vadd.s32 4294967281, %v89_v6  ;;  %vm50_vm0 = vcmp.gt.s32.totalorder %v49_v5, 0  ;;  %vm62_vm1 = vcmp.ge.s32.totalorder %v61_v7, 0 }
  0x1d   :  { %112 = vrot.lane.b32.xlu1 %v323_v1, %s284_s25  ;;  %110 = vrot.lane.b32.xlu0 %v319_v0, %s284_s25  ;;  %vm43_vm4 = vcmp.ge.s32.totalorder %v42_v9, 0  ;;  %v179_v14 = vsel %vm62_vm1, 1.0, %v286_v13  ;;  %vm88_vm7 = vcmp.eq.s32.totalorder %v34_v4, 15  ;;  %vm106_vm8 = vcmp.eq.s32.totalorder %v34_v4, 14  ;;  %p237_p12 = pnand %p236_p11, %p230_p8 }
  0x1e   :  { %v194_v11 = vsel %vm50_vm0, %v193_v8, 0.0  ;;  %v195_v12 = vcvt.s32.f32 %v184_v10  ;;  %vm91_vm6 = vcmp.gt.s32.totalorder %v184_v10, 0  ;;  %v176_v18 = vsel %vm43_vm4, 1.0, %v286_v13 }
  0x1f   :  { %v181_v16 = vsel %vm67_vm2, %v194_v11, 0.0  ;;  %v183_v17 = vsel %vm84_vm3, %v194_v11, 0.0  ;;  %v178_v19 = vsel %vm48_vm5, %v194_v11, 0.0  ;;  %vm102_vm9 = vcmp.le.s32.totalorder %v100_v15, 15 }
  0x20   :  { %v196_v20 = vsel %vm91_vm6, %v195_v12, 0.0  ;;  %v70_v21 = vadd.f32 %v181_v16, %v179_v14  ;;  %v87_v22 = vadd.f32 1.0, %v183_v17  ;;  %v54_v23 = vadd.f32 %v178_v19, %v176_v18 }
  0x21   :  { %129 = vrot.lane.b32.xlu1 %v323_v1, %s285_s0  ;;  %127 = vrot.lane.b32.xlu0 %v319_v0, %s285_s0  ;;  %v186_v26 = vsel %vm88_vm7, %v196_v20, 0.0  ;;  %v187_v27 = vsel %vm102_vm9, 1.0, %v286_v13  ;;  %v189_v28 = vsel %vm106_vm8, %v196_v20, 0.0  ;;  %vm119_vm10 = vcmp.le.s32.totalorder %v89_v6, 15 }
  0x22   :  { %v95_v31 = vadd.f32 %v186_v26, %v87_v22  ;;  %vm123_vm11 = vcmp.eq.s32.totalorder %v34_v4, 13  ;;  %v109_v37 = vadd.f32 %v189_v28, %v187_v27  ;;  %v190_v38 = vsel %vm119_vm10, 1.0, %v286_v13 }
  0x23   :  { %v192_v39 = vsel %vm123_vm11, %v196_v20, 0.0 }
  0x24   :  { %v97_v36 = vmul.f32 %v95_v31, %v323_v1  ;;  %v96_v42 = vmul.f32 %v95_v31, %v319_v0  ;;  %v126_v48 = vadd.f32 %v192_v39, %v190_v38 }
  0x87   :  { %v72_v24 = vpop.permute.xlu1 %71  ;;  %v56_v25 = vpop.permute.xlu0 %55 }
  0x88   :  { %v75_v29 = vmul.f32 %v72_v24, %v70_v21  ;;  %v59_v30 = vmul.f32 %v56_v25, %v54_v23 }
  0x8a   :  { %v77_v40 = vadd.f32 %v75_v29, %v59_v30 }
  0x8b   :  { %v74_v32 = vpop.permute.xlu1 %73  ;;  %v58_v33 = vpop.permute.xlu0 %57 }
  0x8c   :  { %v76_v34 = vmul.f32 %v74_v32, %v70_v21  ;;  %v60_v35 = vmul.f32 %v58_v33, %v54_v23  ;;  %v98_v49 = vadd.f32 %v96_v42, %v77_v40 }
  0x8e   :  { %v78_v41 = vadd.f32 %v76_v34, %v60_v35 }
  0x8f   :  { %v113_v43 = vpop.permute.xlu1 %112  ;;  %v111_v44 = vpop.permute.xlu0 %110 }
  0x90   :  { %v99_v45 = vadd.f32 %v97_v36, %v78_v41  ;;  %v115_v46 = vmul.f32 %v113_v43, %v109_v37  ;;  %v114_v47 = vmul.f32 %v111_v44, %v109_v37 }
  0x92   :  { %v117_v52 = vadd.f32 %v115_v46, %v99_v45  ;;  %v116_v53 = vadd.f32 %v114_v47, %v98_v49 }
  0x93   :  { %v130_v50 = vpop.permute.xlu1 %129  ;;  %v128_v51 = vpop.permute.xlu0 %127 }
  0x94   :  { %v132_v54 = vmul.f32 %v130_v50, %v126_v48  ;;  %v131_v55 = vmul.f32 %v128_v51, %v126_v48 }
  0x96   :  { %v134_v56 = vadd.f32 %v132_v54, %v117_v52  ;;  %v133_v57 = vadd.f32 %v131_v55, %v116_v53 }
  0x98   :  { %v136_v58 = vmul.f32 0.2, %v134_v56  ;;  %v135_v59 = vmul.f32 0.2, %v133_v57 }
  0x9a   :  { %v140_v60 = vsub.f32 %v323_v1, %v136_v58  ;;  %138 = vst [vmem:[#allocation6 + $0x8] sm:$0xff] %v136_v58  ;;  %v139_v61 = vsub.f32 %v319_v0, %v135_v59  ;;  %137 = vst [vmem:[#allocation6] sm:$0xff] %v135_v59 }
  0x9b   :  { %240 = shalt.err (!%p237_p12)
}
  0x9c   :  { %s241_s5 = scalar_lea.hbm %s374_s2, 256 }
  0x9d   :  { %p242_p13 = scmp.ne.s32.totalorder %s374_s2, %s241_s5  ;;  %p245_p0 = scmp.lt.u32.totalorder %s241_s5, %s374_s2 }
  0x9f   :  { %p247_p1 = pnand %p245_p0, %p242_p13 }
  0xa1   :  { %250 = shalt.err (!%p247_p1)
}
  0xa2   :  { %166 = dma.vmem_to_hbm [thread:$0]  %s161_s27, 256, %s374_s2, [#allocation7], %s280_s19, %s280_s19, %s281_s20   ;;  %142 = vst [vmem:[#allocation5 + $0x8] sm:$0xff] %v140_v60  ;;  %141 = vst [vmem:[#allocation5] sm:$0xff] %v139_v61 }
  0xa3   :  { %s251_s12 = scalar_lea.vmem %s335_s29, 256  ;;  %p256_p3 = scmp.lt.s32.totalorder %s335_s29, %s335_s29 }
  0xa4   :  { %p252_p2 = scmp.ne.s32.totalorder %s335_s29, %s251_s12  ;;  %p257_p4 = scmp.lt.s32.totalorder %s251_s12, %s251_s12 }
  0xa6   :  { %p258_p5 = por %p257_p4, %p256_p3 }
  0xa8   :  { %p259_p6 = pnand %p258_p5, %p252_p2 }
  0xaa   :  { %262 = shalt.err (!%p259_p6)
}
  0xab   :  { %s263_s15 = scalar_lea.hbm %s373_s1, 256 }
  0xac   :  { %p264_p7 = scmp.ne.s32.totalorder %s373_s1, %s263_s15  ;;  %p267_p8 = scmp.lt.u32.totalorder %s263_s15, %s373_s1 }
  0xae   :  { %p269_p9 = pnand %p267_p8, %p264_p7 }
  0xb0   :  { %272 = shalt.err (!%p269_p9)
}
  0xb1   :  { %154 = dma.vmem_to_hbm [thread:$0]  %s335_s29, 256, %s373_s1, [#allocation4], %s280_s19, %s280_s19, %s281_s20  }
  0xb2   :  { %275 = dma.done.wait [#allocation4], 256  }
  0xb3   :  { %276 = vsyncadd [#allocation4], 4294967040 }
  0xb4   :  { %277 = dma.done.wait [#allocation7], 256  }
  0xb5   :  { %278 = vsyncadd [#allocation7], 4294967040 }
  0xb6   :  { %173 = vsyncpa [#allocation3], 1 }
  0xb7   :  { %174 = vsyncpa [#allocation4], 1 }
  0xb8   :  { %175 = vsyncpa [#allocation7], 1 }

</bundles_post_ra>
